<compile_context>
chip_gen: v6e
topology: v6e:2x2x1
jax: 0.10.0
libtpu: 0.0.40
codegen_flags: <defaults>
</compile_context>

<pallas_src>
import functools
import math

import jax
import jax.numpy as jnp
from jax.experimental import pallas as pl
from jax.experimental.pallas import tpu as pltpu


def _residual_attention_kernel(*refs, n_head: int, has_mask: bool):
  if has_mask:
    (x_ref, mask_ref,
     ln1_g_ref, ln1_b_ref,
     wqkv_ref, bqkv_ref, wo_ref, bo_ref,
     ln2_g_ref, ln2_b_ref,
     wfc_ref, bfc_ref, wpr_ref, bpr_ref,
     o_ref, ctx_ref) = refs
  else:
    (x_ref,
     ln1_g_ref, ln1_b_ref,
     wqkv_ref, bqkv_ref, wo_ref, bo_ref,
     ln2_g_ref, ln2_b_ref,
     wfc_ref, bfc_ref, wpr_ref, bpr_ref,
     o_ref, ctx_ref) = refs
    mask_ref = None

  x = x_ref[0].astype(jnp.float32)            # (L, D)
  L, D = x.shape
  hd = D // n_head
  eps = 1e-5

  # --- LayerNorm 1 (fp32, matching CLIP's fp32 LayerNorm subclass) ---
  mu = jnp.mean(x, axis=-1, keepdims=True)
  var = jnp.mean(jnp.square(x - mu), axis=-1, keepdims=True)
  h = (x - mu) * jax.lax.rsqrt(var + eps) * ln1_g_ref[...] + ln1_b_ref[...]

  # --- fused QKV projection (bf16 MXU inputs, fp32 accumulation) ---
  qkv = jnp.dot(h.astype(jnp.bfloat16), wqkv_ref[...],
                preferred_element_type=jnp.float32) + bqkv_ref[...]   # (L, 3D)
  scale = 1.0 / math.sqrt(hd)
  q_bf = (qkv[:, :D] * scale).astype(jnp.bfloat16)    # scale folded into q once
  k_bf = qkv[:, D:2 * D].astype(jnp.bfloat16)
  v_bf = qkv[:, 2 * D:].astype(jnp.bfloat16)

  # --- per-head attention; context accumulated in an fp32 VMEM scratch ---
  for hi in range(n_head):                    # static unrolled loop over heads
    lo = hi * hd
    qs = q_bf[:, lo:lo + hd]
    ks = k_bf[:, lo:lo + hd]
    vs = v_bf[:, lo:lo + hd]
    # Q @ K^T expressed as dot_general contracting head_dim on both sides
    # (no explicit transposed copy of K).
    s = jax.lax.dot_general(qs, ks, (((1,), (1,)), ((), ())),
                            preferred_element_type=jnp.float32)       # (L, L)
    if has_mask:
      s = s + mask_ref[...]
    s = s - jnp.max(s, axis=-1, keepdims=True)
    p = jnp.exp(s)
    inv = pl.reciprocal(jnp.sum(p, axis=-1, keepdims=True), approx=True)
    p = (p * inv).astype(jnp.bfloat16)
    ctx_ref[:, lo:lo + hd] = jnp.dot(p, vs, preferred_element_type=jnp.float32)

  attn = jnp.dot(ctx_ref[...].astype(jnp.bfloat16), wo_ref[...],
                 preferred_element_type=jnp.float32) + bo_ref[...]
  x1 = x + attn                               # residual 1

  # --- LayerNorm 2 (fp32) ---
  mu2 = jnp.mean(x1, axis=-1, keepdims=True)
  var2 = jnp.mean(jnp.square(x1 - mu2), axis=-1, keepdims=True)
  h2 = (x1 - mu2) * jax.lax.rsqrt(var2 + eps) * ln2_g_ref[...] + ln2_b_ref[...]

  # --- MLP: Linear(D, 4D) -> QuickGELU -> Linear(4D, D) ---
  f = jnp.dot(h2.astype(jnp.bfloat16), wfc_ref[...],
              preferred_element_type=jnp.float32) + bfc_ref[...]
  f = f * jax.nn.sigmoid(1.702 * f)           # QuickGELU (fp32)
  m = jnp.dot(f.astype(jnp.bfloat16), wpr_ref[...],
              preferred_element_type=jnp.float32) + bpr_ref[...]

  o_ref[0] = (x1 + m).astype(o_ref.dtype)     # residual 2


def residual_attention_block(x_lnd, params, n_head, attn_mask=None):
  """x_lnd: (L, N, D) like PyTorch nn.MultiheadAttention (seq, batch, d_model)."""
  L, N, D = x_lnd.shape
  assert D % n_head == 0
  Lp = ((L + 7) // 8) * 8                     # sublane-align the seq dim
  pad = Lp - L

  x = jnp.transpose(x_lnd, (1, 0, 2))         # (N, L, D)
  if pad:
    x = jnp.pad(x, ((0, 0), (0, pad), (0, 0)))

  has_mask = (attn_mask is not None) or pad > 0
  if has_mask:
    if attn_mask is not None:
      mask = jnp.pad(attn_mask.astype(jnp.float32), ((0, pad), (0, pad)))
    else:
      mask = jnp.zeros((Lp, Lp), jnp.float32)
    if pad:
      # padded key columns get a large negative bias (avoids NaN rows)
      mask = jnp.where(jnp.arange(Lp)[None, :] >= L, -1e9, mask)

  # Fuse QKV weights and keep matmul weights in bf16 (halves weight VMEM and
  # runs the MXU at its bf16 rate); biases / LN params stay fp32.
  to_bf16 = lambda w: w.astype(jnp.bfloat16)
  w_qkv = to_bf16(jnp.concatenate([params["wq"], params["wk"], params["wv"]], axis=1))
  b_qkv = jnp.concatenate([params["bq"], params["bk"], params["bv"]],
                          axis=1).astype(jnp.float32)
  wo = to_bf16(params["wo"])
  wfc = to_bf16(params["wfc"])
  wpr = to_bf16(params["wpr"])

  def full2d(shape):
    return pl.BlockSpec(shape, lambda b: (0, 0))

  in_specs = [pl.BlockSpec((1, Lp, D), lambda b: (b, 0, 0))]   # x
  args = [x]
  if has_mask:
    in_specs.append(full2d((Lp, Lp)))                          # additive mask
    args.append(mask)
  in_specs += [
      full2d((1, D)), full2d((1, D)),               # ln1 gamma / beta
      full2d((D, 3 * D)), full2d((1, 3 * D)),       # fused Wqkv, bqkv
      full2d((D, D)), full2d((1, D)),               # Wo, bo
      full2d((1, D)), full2d((1, D)),               # ln2 gamma / beta
      full2d((D, 4 * D)), full2d((1, 4 * D)),       # c_fc
      full2d((4 * D, D)), full2d((1, D)),           # c_proj
  ]
  args += [params["ln1_g"], params["ln1_b"],
           w_qkv, b_qkv, wo, params["bo"],
           params["ln2_g"], params["ln2_b"],
           wfc, params["bfc"], wpr, params["bpr"]]

  # TODO(synk): for v7x at real CLIP sizes (D >= 768) tile the MLP weights over
  # an extra 'arbitrary' grid axis and add an L-tile 'parallel' axis so small-N
  # inference shards across both TensorCores.
  out = pl.pallas_call(
      functools.partial(_residual_attention_kernel, n_head=n_head,
                        has_mask=has_mask),
      grid=(N,),
      in_specs=in_specs,
      out_specs=pl.BlockSpec((1, Lp, D), lambda b: (b, 0, 0)),
      out_shape=jax.ShapeDtypeStruct((N, Lp, D), x_lnd.dtype),
      scratch_shapes=[pltpu.VMEM((Lp, D), jnp.float32)],
      compiler_params=pltpu.CompilerParams(
          dimension_semantics=("parallel",),
          vmem_limit_bytes=64 * 1024 * 1024),
  )(*args)
  return jnp.transpose(out[:, :L, :], (1, 0, 2))   # back to (L, N, D)


def init_params(key, d_model):
  """Deterministic synthetic init. Weights stored as (in, out) so y = x @ W + b."""
  ks = jax.random.split(key, 10)
  def nrm(k, shape, s=0.02):
    return (s * jax.random.normal(k, shape)).astype(jnp.float32)
  return {
      "ln1_g": jnp.ones((1, d_model), jnp.float32),
      "ln1_b": jnp.zeros((1, d_model), jnp.float32),
      "wq": nrm(ks[0], (d_model, d_model)),
      "bq": nrm(ks[1], (1, d_model)),
      "wk": nrm(ks[2], (d_model, d_model)),
      "bk": nrm(ks[3], (1, d_model)),
      "wv": nrm(ks[4], (d_model, d_model)),
      "bv": nrm(ks[5], (1, d_model)),
      "wo": nrm(ks[6], (d_model, d_model)),
      "bo": jnp.zeros((1, d_model), jnp.float32),
      "ln2_g": jnp.ones((1, d_model), jnp.float32),
      "ln2_b": jnp.zeros((1, d_model), jnp.float32),
      "wfc": nrm(ks[7], (d_model, 4 * d_model)),
      "bfc": nrm(ks[8], (1, 4 * d_model)),
      "wpr": nrm(ks[9], (4 * d_model, d_model)),
      "bpr": jnp.zeros((1, d_model), jnp.float32),
  }


def reference_block(x_lnd, params, n_head, attn_mask=None):
  """Pure-JAX fp32 reference mirroring the PyTorch forward semantics."""
  L, N, D = x_lnd.shape
  hd = D // n_head
  x = jnp.transpose(x_lnd, (1, 0, 2)).astype(jnp.float32)  # (N, L, D)

  def ln(y, g, b):
    mu = jnp.mean(y, -1, keepdims=True)
    var = jnp.mean(jnp.square(y - mu), -1, keepdims=True)
    return (y - mu) * jax.lax.rsqrt(var + 1e-5) * g + b

  h = ln(x, params["ln1_g"], params["ln1_b"])
  q = h @ params["wq"] + params["bq"]
  k = h @ params["wk"] + params["bk"]
  v = h @ params["wv"] + params["bv"]
  qh = q.reshape(N, L, n_head, hd)
  kh = k.reshape(N, L, n_head, hd)
  vh = v.reshape(N, L, n_head, hd)
  s = jnp.einsum("nqhd,nkhd->nhqk", qh, kh) / math.sqrt(hd)
  if attn_mask is not None:
    s = s + attn_mask.astype(jnp.float32)
  p = jax.nn.softmax(s, axis=-1)
  a = jnp.einsum("nhqk,nkhd->nqhd", p, vh).reshape(N, L, D)
  a = a @ params["wo"] + params["bo"]
  x1 = x + a
  h2 = ln(x1, params["ln2_g"], params["ln2_b"])
  f = h2 @ params["wfc"] + params["bfc"]
  f = f * jax.nn.sigmoid(1.702 * f)
  out = x1 + f @ params["wpr"] + params["bpr"]
  return jnp.transpose(out, (1, 0, 2)).astype(x_lnd.dtype)


if __name__ == "__main__":
  N, D, H = 2, 32, 4                          # batch, d_model, n_head
  key = jax.random.PRNGKey(0)
  kx, kp, kx2 = jax.random.split(key, 3)
  params = init_params(kp, D)

  # bf16 MXU inputs with fp32 accumulation vs a pure-fp32 reference -> use a
  # correspondingly looser tolerance.
  TOL = dict(atol=1e-2, rtol=1e-2)

  # 1) default path: attn_mask=None, L multiple of 8 (mask DMA/add elided)
  L = 8
  x = jax.random.normal(kx, (L, N, D), dtype=jnp.float32)
  y = jax.block_until_ready(residual_attention_block(x, params, n_head=H))
  y_ref = reference_block(x, params, n_head=H)
  assert y.shape == (L, N, D)
  assert jnp.allclose(y, y_ref, **TOL), "mismatch (no mask)"

  # 2) causal additive mask path
  causal = jnp.where(jnp.arange(L)[None, :] > jnp.arange(L)[:, None],
                     -jnp.inf, 0.0).astype(jnp.float32)
  y = jax.block_until_ready(
      residual_attention_block(x, params, n_head=H, attn_mask=causal))
  y_ref = reference_block(x, params, n_head=H, attn_mask=causal)
  assert jnp.allclose(y, y_ref, **TOL), "mismatch (causal mask)"

  # 3) ragged L (exercises sublane padding + internal key mask)
  L2 = 12
  x2 = jax.random.normal(kx2, (L2, N, D), dtype=jnp.float32)
  y2 = jax.block_until_ready(residual_attention_block(x2, params, n_head=H))
  y2_ref = reference_block(x2, params, n_head=H)
  assert y2.shape == (L2, N, D)
  assert jnp.allclose(y2, y2_ref, **TOL), "mismatch (padded L)"

  print("KERNEL_OK")
</pallas_src>

<mosaic_0001>
module attributes {stable_mosaic.version = 11 : i64} {
  func.func @_residual_attention_kernel(%arg0: i32, %arg1: memref<1x8x32xf32, #tpu.memory_space<vmem>>, %arg2: memref<1x32xf32, #tpu.memory_space<vmem>>, %arg3: memref<1x32xf32, #tpu.memory_space<vmem>>, %arg4: memref<32x96xbf16, #tpu.memory_space<vmem>>, %arg5: memref<1x96xf32, #tpu.memory_space<vmem>>, %arg6: memref<32x32xbf16, #tpu.memory_space<vmem>>, %arg7: memref<1x32xf32, #tpu.memory_space<vmem>>, %arg8: memref<1x32xf32, #tpu.memory_space<vmem>>, %arg9: memref<1x32xf32, #tpu.memory_space<vmem>>, %arg10: memref<32x128xbf16, #tpu.memory_space<vmem>>, %arg11: memref<1x128xf32, #tpu.memory_space<vmem>>, %arg12: memref<128x32xbf16, #tpu.memory_space<vmem>>, %arg13: memref<1x32xf32, #tpu.memory_space<vmem>>, %arg14: memref<1x8x32xf32, #tpu.memory_space<vmem>>, %arg15: memref<8x32xf32, #tpu.memory_space<vmem>>) attributes {dimension_semantics = [#tpu.dimension_semantics<parallel>], iteration_bounds = array<i64: 2>, scalar_prefetch = 0 : i64, scratch_operands = 1 : i64, tpu.core_type = #tpu.core_type<tc>, window_params = [{transform_indices = @transform_0, window_bounds = array<i64: 1, 8, 32>}, {pipeline_mode = #tpu.pipeline_mode<synchronous>, transform_indices = @transform_1, window_bounds = array<i64: 1, 32>}, {pipeline_mode = #tpu.pipeline_mode<synchronous>, transform_indices = @transform_2, window_bounds = array<i64: 1, 32>}, {pipeline_mode = #tpu.pipeline_mode<synchronous>, transform_indices = @transform_3, window_bounds = array<i64: 32, 96>}, {pipeline_mode = #tpu.pipeline_mode<synchronous>, transform_indices = @transform_4, window_bounds = array<i64: 1, 96>}, {pipeline_mode = #tpu.pipeline_mode<synchronous>, transform_indices = @transform_5, window_bounds = array<i64: 32, 32>}, {pipeline_mode = #tpu.pipeline_mode<synchronous>, transform_indices = @transform_6, window_bounds = array<i64: 1, 32>}, {pipeline_mode = #tpu.pipeline_mode<synchronous>, transform_indices = @transform_7, window_bounds = array<i64: 1, 32>}, {pipeline_mode = #tpu.pipeline_mode<synchronous>, transform_indices = @transform_8, window_bounds = array<i64: 1, 32>}, {pipeline_mode = #tpu.pipeline_mode<synchronous>, transform_indices = @transform_9, window_bounds = array<i64: 32, 128>}, {pipeline_mode = #tpu.pipeline_mode<synchronous>, transform_indices = @transform_10, window_bounds = array<i64: 1, 128>}, {pipeline_mode = #tpu.pipeline_mode<synchronous>, transform_indices = @transform_11, window_bounds = array<i64: 128, 32>}, {pipeline_mode = #tpu.pipeline_mode<synchronous>, transform_indices = @transform_12, window_bounds = array<i64: 1, 32>}, {transform_indices = @transform_13, window_bounds = array<i64: 1, 8, 32>}]} {
    %c0 = arith.constant 0 : index
    %c0_0 = arith.constant 0 : index
    %c0_1 = arith.constant 0 : index
    %0 = vector.load %arg1[%c0, %c0_0, %c0_1] : memref<1x8x32xf32, #tpu.memory_space<vmem>>, vector<1x8x32xf32>
    %1 = vector.shape_cast %0 : vector<1x8x32xf32> to vector<8x32xf32>
    %cst = arith.constant dense<0.000000e+00> : vector<8xf32>
    %2 = vector.multi_reduction <add>, %1, %cst [1] : vector<8x32xf32> to vector<8xf32>
    %3 = vector.shape_cast %2 : vector<8xf32> to vector<8x1xf32>
    %cst_2 = arith.constant 3.200000e+01 : f32
    %4 = vector.broadcast %cst_2 : f32 to vector<8x1xf32>
    %5 = arith.divf %3, %4 : vector<8x1xf32>
    %6 = vector.broadcast %5 : vector<8x1xf32> to vector<8x32xf32>
    %7 = arith.subf %1, %6 : vector<8x32xf32>
    %8 = arith.mulf %7, %7 : vector<8x32xf32>
    %cst_3 = arith.constant dense<0.000000e+00> : vector<8xf32>
    %9 = vector.multi_reduction <add>, %8, %cst_3 [1] : vector<8x32xf32> to vector<8xf32>
    %10 = vector.shape_cast %9 : vector<8xf32> to vector<8x1xf32>
    %cst_4 = arith.constant 3.200000e+01 : f32
    %11 = vector.broadcast %cst_4 : f32 to vector<8x1xf32>
    %12 = arith.divf %10, %11 : vector<8x1xf32>
    %13 = vector.broadcast %5 : vector<8x1xf32> to vector<8x32xf32>
    %14 = arith.subf %1, %13 : vector<8x32xf32>
    %cst_5 = arith.constant 9.99999974E-6 : f32
    %15 = vector.broadcast %cst_5 : f32 to vector<8x1xf32>
    %16 = arith.addf %12, %15 : vector<8x1xf32>
    %17 = math.rsqrt %16 : vector<8x1xf32>
    %18 = vector.broadcast %17 : vector<8x1xf32> to vector<8x32xf32>
    %19 = arith.mulf %14, %18 : vector<8x32xf32>
    %c0_6 = arith.constant 0 : index
    %c0_7 = arith.constant 0 : index
    %20 = vector.load %arg2[%c0_6, %c0_7] : memref<1x32xf32, #tpu.memory_space<vmem>>, vector<1x32xf32>
    %21 = vector.broadcast %20 : vector<1x32xf32> to vector<8x32xf32>
    %22 = arith.mulf %19, %21 : vector<8x32xf32>
    %c0_8 = arith.constant 0 : index
    %c0_9 = arith.constant 0 : index
    %23 = vector.load %arg3[%c0_8, %c0_9] : memref<1x32xf32, #tpu.memory_space<vmem>>, vector<1x32xf32>
    %24 = vector.broadcast %23 : vector<1x32xf32> to vector<8x32xf32>
    %25 = arith.addf %22, %24 : vector<8x32xf32>
    %26 = arith.truncf %25 : vector<8x32xf32> to vector<8x32xbf16>
    %c0_10 = arith.constant 0 : index
    %c0_11 = arith.constant 0 : index
    %27 = vector.load %arg4[%c0_10, %c0_11] : memref<32x96xbf16, #tpu.memory_space<vmem>>, vector<32x96xbf16>
    %cst_12 = arith.constant dense<0.000000e+00> : vector<8x96xf32>
    %28 = tpu.matmul %26, %27, %cst_12 {dimension_numbers = #tpu.dot_dimension_numbers<[1], [0], [0], [1], [0, 0, 1, 1], [], []>} : vector<8x32xbf16>, vector<32x96xbf16>, vector<8x96xf32> -> vector<8x96xf32>
    %c0_13 = arith.constant 0 : index
    %c0_14 = arith.constant 0 : index
    %29 = vector.load %arg5[%c0_13, %c0_14] : memref<1x96xf32, #tpu.memory_space<vmem>>, vector<1x96xf32>
    %30 = vector.broadcast %29 : vector<1x96xf32> to vector<8x96xf32>
    %31 = arith.addf %28, %30 : vector<8x96xf32>
    %32 = vector.extract_strided_slice %31 {offsets = [0, 0], sizes = [8, 32], strides = [1, 1]} : vector<8x96xf32> to vector<8x32xf32>
    %cst_15 = arith.constant 0.353553385 : f32
    %33 = vector.broadcast %cst_15 : f32 to vector<8x32xf32>
    %34 = arith.mulf %32, %33 : vector<8x32xf32>
    %35 = arith.truncf %34 : vector<8x32xf32> to vector<8x32xbf16>
    %36 = vector.extract_strided_slice %31 {offsets = [0, 32], sizes = [8, 32], strides = [1, 1]} : vector<8x96xf32> to vector<8x32xf32>
    %37 = arith.truncf %36 : vector<8x32xf32> to vector<8x32xbf16>
    %38 = vector.extract_strided_slice %31 {offsets = [0, 64], sizes = [8, 32], strides = [1, 1]} : vector<8x96xf32> to vector<8x32xf32>
    %39 = arith.truncf %38 : vector<8x32xf32> to vector<8x32xbf16>
    %40 = vector.extract_strided_slice %35 {offsets = [0, 0], sizes = [8, 8], strides = [1, 1]} : vector<8x32xbf16> to vector<8x8xbf16>
    %41 = vector.extract_strided_slice %37 {offsets = [0, 0], sizes = [8, 8], strides = [1, 1]} : vector<8x32xbf16> to vector<8x8xbf16>
    %42 = vector.extract_strided_slice %39 {offsets = [0, 0], sizes = [8, 8], strides = [1, 1]} : vector<8x32xbf16> to vector<8x8xbf16>
    %cst_16 = arith.constant dense<0.000000e+00> : vector<8x8xf32>
    %43 = tpu.matmul %40, %41, %cst_16 {dimension_numbers = #tpu.dot_dimension_numbers<[1], [1], [0], [0], [0, 0, 1, 0], [], []>} : vector<8x8xbf16>, vector<8x8xbf16>, vector<8x8xf32> -> vector<8x8xf32>
    %cst_17 = arith.constant dense<0xFF800000> : vector<8xf32>
    %44 = vector.multi_reduction <maximumf>, %43, %cst_17 [1] : vector<8x8xf32> to vector<8xf32>
    %45 = vector.shape_cast %44 : vector<8xf32> to vector<8x1xf32>
    %46 = vector.broadcast %45 : vector<8x1xf32> to vector<8x8xf32>
    %47 = arith.subf %43, %46 : vector<8x8xf32>
    %48 = math.exp %47 : vector<8x8xf32>
    %cst_18 = arith.constant dense<0.000000e+00> : vector<8xf32>
    %49 = vector.multi_reduction <add>, %48, %cst_18 [1] : vector<8x8xf32> to vector<8xf32>
    %50 = vector.shape_cast %49 : vector<8xf32> to vector<8x1xf32>
    %51 = tpu.reciprocal %50 {approx = true} : vector<8x1xf32> -> vector<8x1xf32>
    %52 = vector.broadcast %51 : vector<8x1xf32> to vector<8x8xf32>
    %53 = arith.mulf %48, %52 : vector<8x8xf32>
    %54 = arith.truncf %53 : vector<8x8xf32> to vector<8x8xbf16>
    %cst_19 = arith.constant dense<0.000000e+00> : vector<8x8xf32>
    %55 = tpu.matmul %54, %42, %cst_19 {dimension_numbers = #tpu.dot_dimension_numbers<[1], [0], [0], [1], [0, 0, 1, 1], [], []>} : vector<8x8xbf16>, vector<8x8xbf16>, vector<8x8xf32> -> vector<8x8xf32>
    %c0_20 = arith.constant 0 : index
    %c0_21 = arith.constant 0 : index
    %56 = vector.load %arg15[%c0_20, %c0_21] : memref<8x32xf32, #tpu.memory_space<vmem>>, vector<8x8xf32>
    tpu.vector_store %arg15[%c0_20, %c0_21], %55 {strides = array<i32>} : memref<8x32xf32, #tpu.memory_space<vmem>>, vector<8x8xf32>,
    %57 = vector.extract_strided_slice %35 {offsets = [0, 8], sizes = [8, 8], strides = [1, 1]} : vector<8x32xbf16> to vector<8x8xbf16>
    %58 = vector.extract_strided_slice %37 {offsets = [0, 8], sizes = [8, 8], strides = [1, 1]} : vector<8x32xbf16> to vector<8x8xbf16>
    %59 = vector.extract_strided_slice %39 {offsets = [0, 8], sizes = [8, 8], strides = [1, 1]} : vector<8x32xbf16> to vector<8x8xbf16>
    %cst_22 = arith.constant dense<0.000000e+00> : vector<8x8xf32>
    %60 = tpu.matmul %57, %58, %cst_22 {dimension_numbers = #tpu.dot_dimension_numbers<[1], [1], [0], [0], [0, 0, 1, 0], [], []>} : vector<8x8xbf16>, vector<8x8xbf16>, vector<8x8xf32> -> vector<8x8xf32>
    %cst_23 = arith.constant dense<0xFF800000> : vector<8xf32>
    %61 = vector.multi_reduction <maximumf>, %60, %cst_23 [1] : vector<8x8xf32> to vector<8xf32>
    %62 = vector.shape_cast %61 : vector<8xf32> to vector<8x1xf32>
    %63 = vector.broadcast %62 : vector<8x1xf32> to vector<8x8xf32>
    %64 = arith.subf %60, %63 : vector<8x8xf32>
    %65 = math.exp %64 : vector<8x8xf32>
    %cst_24 = arith.constant dense<0.000000e+00> : vector<8xf32>
    %66 = vector.multi_reduction <add>, %65, %cst_24 [1] : vector<8x8xf32> to vector<8xf32>
    %67 = vector.shape_cast %66 : vector<8xf32> to vector<8x1xf32>
    %68 = tpu.reciprocal %67 {approx = true} : vector<8x1xf32> -> vector<8x1xf32>
    %69 = vector.broadcast %68 : vector<8x1xf32> to vector<8x8xf32>
    %70 = arith.mulf %65, %69 : vector<8x8xf32>
    %71 = arith.truncf %70 : vector<8x8xf32> to vector<8x8xbf16>
    %cst_25 = arith.constant dense<0.000000e+00> : vector<8x8xf32>
    %72 = tpu.matmul %71, %59, %cst_25 {dimension_numbers = #tpu.dot_dimension_numbers<[1], [0], [0], [1], [0, 0, 1, 1], [], []>} : vector<8x8xbf16>, vector<8x8xbf16>, vector<8x8xf32> -> vector<8x8xf32>
    %c0_26 = arith.constant 0 : index
    %c8 = arith.constant 8 : index
    %73 = vector.load %arg15[%c0_26, %c8] : memref<8x32xf32, #tpu.memory_space<vmem>>, vector<8x8xf32>
    tpu.vector_store %arg15[%c0_26, %c8], %72 {strides = array<i32>} : memref<8x32xf32, #tpu.memory_space<vmem>>, vector<8x8xf32>,
    %74 = vector.extract_strided_slice %35 {offsets = [0, 16], sizes = [8, 8], strides = [1, 1]} : vector<8x32xbf16> to vector<8x8xbf16>
    %75 = vector.extract_strided_slice %37 {offsets = [0, 16], sizes = [8, 8], strides = [1, 1]} : vector<8x32xbf16> to vector<8x8xbf16>
    %76 = vector.extract_strided_slice %39 {offsets = [0, 16], sizes = [8, 8], strides = [1, 1]} : vector<8x32xbf16> to vector<8x8xbf16>
    %cst_27 = arith.constant dense<0.000000e+00> : vector<8x8xf32>
    %77 = tpu.matmul %74, %75, %cst_27 {dimension_numbers = #tpu.dot_dimension_numbers<[1], [1], [0], [0], [0, 0, 1, 0], [], []>} : vector<8x8xbf16>, vector<8x8xbf16>, vector<8x8xf32> -> vector<8x8xf32>
    %cst_28 = arith.constant dense<0xFF800000> : vector<8xf32>
    %78 = vector.multi_reduction <maximumf>, %77, %cst_28 [1] : vector<8x8xf32> to vector<8xf32>
    %79 = vector.shape_cast %78 : vector<8xf32> to vector<8x1xf32>
    %80 = vector.broadcast %79 : vector<8x1xf32> to vector<8x8xf32>
    %81 = arith.subf %77, %80 : vector<8x8xf32>
    %82 = math.exp %81 : vector<8x8xf32>
    %cst_29 = arith.constant dense<0.000000e+00> : vector<8xf32>
    %83 = vector.multi_reduction <add>, %82, %cst_29 [1] : vector<8x8xf32> to vector<8xf32>
    %84 = vector.shape_cast %83 : vector<8xf32> to vector<8x1xf32>
    %85 = tpu.reciprocal %84 {approx = true} : vector<8x1xf32> -> vector<8x1xf32>
    %86 = vector.broadcast %85 : vector<8x1xf32> to vector<8x8xf32>
    %87 = arith.mulf %82, %86 : vector<8x8xf32>
    %88 = arith.truncf %87 : vector<8x8xf32> to vector<8x8xbf16>
    %cst_30 = arith.constant dense<0.000000e+00> : vector<8x8xf32>
    %89 = tpu.matmul %88, %76, %cst_30 {dimension_numbers = #tpu.dot_dimension_numbers<[1], [0], [0], [1], [0, 0, 1, 1], [], []>} : vector<8x8xbf16>, vector<8x8xbf16>, vector<8x8xf32> -> vector<8x8xf32>
    %c0_31 = arith.constant 0 : index
    %c16 = arith.constant 16 : index
    %90 = vector.load %arg15[%c0_31, %c16] : memref<8x32xf32, #tpu.memory_space<vmem>>, vector<8x8xf32>
    tpu.vector_store %arg15[%c0_31, %c16], %89 {strides = array<i32>} : memref<8x32xf32, #tpu.memory_space<vmem>>, vector<8x8xf32>,
    %91 = vector.extract_strided_slice %35 {offsets = [0, 24], sizes = [8, 8], strides = [1, 1]} : vector<8x32xbf16> to vector<8x8xbf16>
    %92 = vector.extract_strided_slice %37 {offsets = [0, 24], sizes = [8, 8], strides = [1, 1]} : vector<8x32xbf16> to vector<8x8xbf16>
    %93 = vector.extract_strided_slice %39 {offsets = [0, 24], sizes = [8, 8], strides = [1, 1]} : vector<8x32xbf16> to vector<8x8xbf16>
    %cst_32 = arith.constant dense<0.000000e+00> : vector<8x8xf32>
    %94 = tpu.matmul %91, %92, %cst_32 {dimension_numbers = #tpu.dot_dimension_numbers<[1], [1], [0], [0], [0, 0, 1, 0], [], []>} : vector<8x8xbf16>, vector<8x8xbf16>, vector<8x8xf32> -> vector<8x8xf32>
    %cst_33 = arith.constant dense<0xFF800000> : vector<8xf32>
    %95 = vector.multi_reduction <maximumf>, %94, %cst_33 [1] : vector<8x8xf32> to vector<8xf32>
    %96 = vector.shape_cast %95 : vector<8xf32> to vector<8x1xf32>
    %97 = vector.broadcast %96 : vector<8x1xf32> to vector<8x8xf32>
    %98 = arith.subf %94, %97 : vector<8x8xf32>
    %99 = math.exp %98 : vector<8x8xf32>
    %cst_34 = arith.constant dense<0.000000e+00> : vector<8xf32>
    %100 = vector.multi_reduction <add>, %99, %cst_34 [1] : vector<8x8xf32> to vector<8xf32>
    %101 = vector.shape_cast %100 : vector<8xf32> to vector<8x1xf32>
    %102 = tpu.reciprocal %101 {approx = true} : vector<8x1xf32> -> vector<8x1xf32>
    %103 = vector.broadcast %102 : vector<8x1xf32> to vector<8x8xf32>
    %104 = arith.mulf %99, %103 : vector<8x8xf32>
    %105 = arith.truncf %104 : vector<8x8xf32> to vector<8x8xbf16>
    %cst_35 = arith.constant dense<0.000000e+00> : vector<8x8xf32>
    %106 = tpu.matmul %105, %93, %cst_35 {dimension_numbers = #tpu.dot_dimension_numbers<[1], [0], [0], [1], [0, 0, 1, 1], [], []>} : vector<8x8xbf16>, vector<8x8xbf16>, vector<8x8xf32> -> vector<8x8xf32>
    %c0_36 = arith.constant 0 : index
    %c24 = arith.constant 24 : index
    %107 = vector.load %arg15[%c0_36, %c24] : memref<8x32xf32, #tpu.memory_space<vmem>>, vector<8x8xf32>
    tpu.vector_store %arg15[%c0_36, %c24], %106 {strides = array<i32>} : memref<8x32xf32, #tpu.memory_space<vmem>>, vector<8x8xf32>,
    %c0_37 = arith.constant 0 : index
    %c0_38 = arith.constant 0 : index
    %108 = vector.load %arg15[%c0_37, %c0_38] : memref<8x32xf32, #tpu.memory_space<vmem>>, vector<8x32xf32>
    %109 = arith.truncf %108 : vector<8x32xf32> to vector<8x32xbf16>
    %c0_39 = arith.constant 0 : index
    %c0_40 = arith.constant 0 : index
    %110 = vector.load %arg6[%c0_39, %c0_40] : memref<32x32xbf16, #tpu.memory_space<vmem>>, vector<32x32xbf16>
    %cst_41 = arith.constant dense<0.000000e+00> : vector<8x32xf32>
    %111 = tpu.matmul %109, %110, %cst_41 {dimension_numbers = #tpu.dot_dimension_numbers<[1], [0], [0], [1], [0, 0, 1, 1], [], []>} : vector<8x32xbf16>, vector<32x32xbf16>, vector<8x32xf32> -> vector<8x32xf32>
    %c0_42 = arith.constant 0 : index
    %c0_43 = arith.constant 0 : index
    %112 = vector.load %arg7[%c0_42, %c0_43] : memref<1x32xf32, #tpu.memory_space<vmem>>, vector<1x32xf32>
    %113 = vector.broadcast %112 : vector<1x32xf32> to vector<8x32xf32>
    %114 = arith.addf %111, %113 : vector<8x32xf32>
    %115 = arith.addf %1, %114 : vector<8x32xf32>
    %cst_44 = arith.constant dense<0.000000e+00> : vector<8xf32>
    %116 = vector.multi_reduction <add>, %115, %cst_44 [1] : vector<8x32xf32> to vector<8xf32>
    %117 = vector.shape_cast %116 : vector<8xf32> to vector<8x1xf32>
    %cst_45 = arith.constant 3.200000e+01 : f32
    %118 = vector.broadcast %cst_45 : f32 to vector<8x1xf32>
    %119 = arith.divf %117, %118 : vector<8x1xf32>
    %120 = vector.broadcast %119 : vector<8x1xf32> to vector<8x32xf32>
    %121 = arith.subf %115, %120 : vector<8x32xf32>
    %122 = arith.mulf %121, %121 : vector<8x32xf32>
    %cst_46 = arith.constant dense<0.000000e+00> : vector<8xf32>
    %123 = vector.multi_reduction <add>, %122, %cst_46 [1] : vector<8x32xf32> to vector<8xf32>
    %124 = vector.shape_cast %123 : vector<8xf32> to vector<8x1xf32>
    %cst_47 = arith.constant 3.200000e+01 : f32
    %125 = vector.broadcast %cst_47 : f32 to vector<8x1xf32>
    %126 = arith.divf %124, %125 : vector<8x1xf32>
    %127 = vector.broadcast %119 : vector<8x1xf32> to vector<8x32xf32>
    %128 = arith.subf %115, %127 : vector<8x32xf32>
    %cst_48 = arith.constant 9.99999974E-6 : f32
    %129 = vector.broadcast %cst_48 : f32 to vector<8x1xf32>
    %130 = arith.addf %126, %129 : vector<8x1xf32>
    %131 = math.rsqrt %130 : vector<8x1xf32>
    %132 = vector.broadcast %131 : vector<8x1xf32> to vector<8x32xf32>
    %133 = arith.mulf %128, %132 : vector<8x32xf32>
    %c0_49 = arith.constant 0 : index
    %c0_50 = arith.constant 0 : index
    %134 = vector.load %arg8[%c0_49, %c0_50] : memref<1x32xf32, #tpu.memory_space<vmem>>, vector<1x32xf32>
    %135 = vector.broadcast %134 : vector<1x32xf32> to vector<8x32xf32>
    %136 = arith.mulf %133, %135 : vector<8x32xf32>
    %c0_51 = arith.constant 0 : index
    %c0_52 = arith.constant 0 : index
    %137 = vector.load %arg9[%c0_51, %c0_52] : memref<1x32xf32, #tpu.memory_space<vmem>>, vector<1x32xf32>
    %138 = vector.broadcast %137 : vector<1x32xf32> to vector<8x32xf32>
    %139 = arith.addf %136, %138 : vector<8x32xf32>
    %140 = arith.truncf %139 : vector<8x32xf32> to vector<8x32xbf16>
    %c0_53 = arith.constant 0 : index
    %c0_54 = arith.constant 0 : index
    %141 = vector.load %arg10[%c0_53, %c0_54] : memref<32x128xbf16, #tpu.memory_space<vmem>>, vector<32x128xbf16>
    %cst_55 = arith.constant dense<0.000000e+00> : vector<8x128xf32>
    %142 = tpu.matmul %140, %141, %cst_55 {dimension_numbers = #tpu.dot_dimension_numbers<[1], [0], [0], [1], [0, 0, 1, 1], [], []>} : vector<8x32xbf16>, vector<32x128xbf16>, vector<8x128xf32> -> vector<8x128xf32>
    %c0_56 = arith.constant 0 : index
    %c0_57 = arith.constant 0 : index
    %143 = vector.load %arg11[%c0_56, %c0_57] : memref<1x128xf32, #tpu.memory_space<vmem>>, vector<1x128xf32>
    %144 = vector.broadcast %143 : vector<1x128xf32> to vector<8x128xf32>
    %145 = arith.addf %142, %144 : vector<8x128xf32>
    %cst_58 = arith.constant 1.702000e+00 : f32
    %146 = vector.broadcast %cst_58 : f32 to vector<8x128xf32>
    %147 = arith.mulf %146, %145 : vector<8x128xf32>
    %148 = arith.negf %147 : vector<8x128xf32>
    %149 = math.exp %148 : vector<8x128xf32>
    %cst_59 = arith.constant 1.000000e+00 : f32
    %150 = vector.broadcast %cst_59 : f32 to vector<8x128xf32>
    %151 = arith.addf %150, %149 : vector<8x128xf32>
    %152 = arith.divf %150, %151 : vector<8x128xf32>
    %153 = arith.mulf %145, %152 : vector<8x128xf32>
    %154 = arith.truncf %153 : vector<8x128xf32> to vector<8x128xbf16>
    %c0_60 = arith.constant 0 : index
    %c0_61 = arith.constant 0 : index
    %155 = vector.load %arg12[%c0_60, %c0_61] : memref<128x32xbf16, #tpu.memory_space<vmem>>, vector<128x32xbf16>
    %cst_62 = arith.constant dense<0.000000e+00> : vector<8x32xf32>
    %156 = tpu.matmul %154, %155, %cst_62 {dimension_numbers = #tpu.dot_dimension_numbers<[1], [0], [0], [1], [0, 0, 1, 1], [], []>} : vector<8x128xbf16>, vector<128x32xbf16>, vector<8x32xf32> -> vector<8x32xf32>
    %c0_63 = arith.constant 0 : index
    %c0_64 = arith.constant 0 : index
    %157 = vector.load %arg13[%c0_63, %c0_64] : memref<1x32xf32, #tpu.memory_space<vmem>>, vector<1x32xf32>
    %158 = vector.broadcast %157 : vector<1x32xf32> to vector<8x32xf32>
    %159 = arith.addf %156, %158 : vector<8x32xf32>
    %160 = arith.addf %115, %159 : vector<8x32xf32>
    %c0_65 = arith.constant 0 : index
    %c0_66 = arith.constant 0 : index
    %c0_67 = arith.constant 0 : index
    %161 = vector.load %arg14[%c0_65, %c0_66, %c0_67] : memref<1x8x32xf32, #tpu.memory_space<vmem>>, vector<1x8x32xf32>
    %162 = vector.shape_cast %161 : vector<1x8x32xf32> to vector<8x32xf32>
    %163 = vector.shape_cast %160 : vector<8x32xf32> to vector<1x8x32xf32>
    tpu.vector_store %arg14[%c0_65, %c0_66, %c0_67], %163 {strides = array<i32>} : memref<1x8x32xf32, #tpu.memory_space<vmem>>, vector<1x8x32xf32>,
    return
  }
  func.func @transform_0(%arg0: i32) -> (i32, i32, i32) {
    %c0_i32 = arith.constant 0 : i32
    %c0_i32_0 = arith.constant 0 : i32
    %c0_i32_1 = arith.constant 0 : i32
    return %arg0, %c0_i32, %c0_i32_0 : i32, i32, i32
  }
  func.func @transform_1(%arg0: i32) -> (i32, i32) {
    %c0_i32 = arith.constant 0 : i32
    %c0_i32_0 = arith.constant 0 : i32
    %c0_i32_1 = arith.constant 0 : i32
    return %c0_i32, %c0_i32_0 : i32, i32
  }
  func.func @transform_2(%arg0: i32) -> (i32, i32) {
    %c0_i32 = arith.constant 0 : i32
    %c0_i32_0 = arith.constant 0 : i32
    %c0_i32_1 = arith.constant 0 : i32
    return %c0_i32, %c0_i32_0 : i32, i32
  }
  func.func @transform_3(%arg0: i32) -> (i32, i32) {
    %c0_i32 = arith.constant 0 : i32
    %c0_i32_0 = arith.constant 0 : i32
    %c0_i32_1 = arith.constant 0 : i32
    return %c0_i32, %c0_i32_0 : i32, i32
  }
  func.func @transform_4(%arg0: i32) -> (i32, i32) {
    %c0_i32 = arith.constant 0 : i32
    %c0_i32_0 = arith.constant 0 : i32
    %c0_i32_1 = arith.constant 0 : i32
    return %c0_i32, %c0_i32_0 : i32, i32
  }
  func.func @transform_5(%arg0: i32) -> (i32, i32) {
    %c0_i32 = arith.constant 0 : i32
    %c0_i32_0 = arith.constant 0 : i32
    %c0_i32_1 = arith.constant 0 : i32
    return %c0_i32, %c0_i32_0 : i32, i32
  }
  func.func @transform_6(%arg0: i32) -> (i32, i32) {
    %c0_i32 = arith.constant 0 : i32
    %c0_i32_0 = arith.constant 0 : i32
    %c0_i32_1 = arith.constant 0 : i32
    return %c0_i32, %c0_i32_0 : i32, i32
  }
  func.func @transform_7(%arg0: i32) -> (i32, i32) {
    %c0_i32 = arith.constant 0 : i32
    %c0_i32_0 = arith.constant 0 : i32
    %c0_i32_1 = arith.constant 0 : i32
    return %c0_i32, %c0_i32_0 : i32, i32
  }
  func.func @transform_8(%arg0: i32) -> (i32, i32) {
    %c0_i32 = arith.constant 0 : i32
    %c0_i32_0 = arith.constant 0 : i32
    %c0_i32_1 = arith.constant 0 : i32
    return %c0_i32, %c0_i32_0 : i32, i32
  }
  func.func @transform_9(%arg0: i32) -> (i32, i32) {
    %c0_i32 = arith.constant 0 : i32
    %c0_i32_0 = arith.constant 0 : i32
    %c0_i32_1 = arith.constant 0 : i32
    return %c0_i32, %c0_i32_0 : i32, i32
  }
  func.func @transform_10(%arg0: i32) -> (i32, i32) {
    %c0_i32 = arith.constant 0 : i32
    %c0_i32_0 = arith.constant 0 : i32
    %c0_i32_1 = arith.constant 0 : i32
    return %c0_i32, %c0_i32_0 : i32, i32
  }
  func.func @transform_11(%arg0: i32) -> (i32, i32) {
    %c0_i32 = arith.constant 0 : i32
    %c0_i32_0 = arith.constant 0 : i32
    %c0_i32_1 = arith.constant 0 : i32
    return %c0_i32, %c0_i32_0 : i32, i32
  }
  func.func @transform_12(%arg0: i32) -> (i32, i32) {
    %c0_i32 = arith.constant 0 : i32
    %c0_i32_0 = arith.constant 0 : i32
    %c0_i32_1 = arith.constant 0 : i32
    return %c0_i32, %c0_i32_0 : i32, i32
  }
  func.func @transform_13(%arg0: i32) -> (i32, i32, i32) {
    %c0_i32 = arith.constant 0 : i32
    %c0_i32_0 = arith.constant 0 : i32
    %c0_i32_1 = arith.constant 0 : i32
    return %arg0, %c0_i32, %c0_i32_0 : i32, i32, i32
  }
}

</mosaic_0001>

<bundles_post_ra>
// kernel: tpu_custom_call.1
= control target key start
LH: loop header
LB: loop body
LE: loop exit
PB: predicated region body
PF: predicated region fallthrough
CT: control target
= control target key end

     0   :  { %s2036_s0 = inlined_call_operand.vmem [shape: f32[2,8,32], index: 0, kind: input, shape index: {}]   ;;  %s2037_s1 = inlined_call_operand.vmem [shape: f32[1,32], index: 1, kind: input, shape index: {}]   ;;  %s2038_s2 = inlined_call_operand.vmem [shape: f32[1,32], index: 2, kind: input, shape index: {}]   ;;  %s2039_s3 = inlined_call_operand.vmem [shape: bf16[32,96], index: 3, kind: input, shape index: {}]   ;;  %s2040_s4 = inlined_call_operand.vmem [shape: f32[1,96], index: 4, kind: input, shape index: {}]   ;;  %s2041_s5 = inlined_call_operand.vmem [shape: bf16[32,32], index: 5, kind: input, shape index: {}]   ;;  %s2042_s6 = inlined_call_operand.vmem [shape: f32[1,32], index: 6, kind: input, shape index: {}]   ;;  %s2043_s7 = inlined_call_operand.vmem [shape: f32[1,32], index: 7, kind: input, shape index: {}]   ;;  %s2044_s8 = inlined_call_operand.vmem [shape: f32[1,32], index: 8, kind: input, shape index: {}]   ;;  %s2045_s9 = inlined_call_operand.vmem [shape: bf16[32,128], index: 9, kind: input, shape index: {}]   ;;  %s2046_s10 = inlined_call_operand.vmem [shape: f32[1,128], index: 10, kind: input, shape index: {}]   ;;  %s2047_s11 = inlined_call_operand.vmem [shape: bf16[128,32], index: 11, kind: input, shape index: {}]   ;;  %s2048_s12 = inlined_call_operand.vmem [shape: f32[1,32], index: 12, kind: input, shape index: {}]   ;;  %s2049_s13 = inlined_call_operand.hbm [shape: f32[2,8,32], index: 13, kind: output, shape index: {}]  }
   0x1   :  { %2050 = sst [smem:[#allocation6_spill]] %s2036_s0 }
   0x2   :  { %2051 = sst [smem:[#allocation7_spill]] %s2037_s1 }
   0x3   :  { %2052 = sst [smem:[#allocation8_spill]] %s2038_s2 }
   0x4   :  { %18 = vsyncpa [#allocation4], 0 }
   0x5   :  { %20 = vsyncpa [#allocation4 + $0x1], 0  ;;  %s1772_s25 = smov 0   ;;  %s1774_s26 = smov 0  }
   0x6   :  { %s1776_s27 = smov 0   ;;  %s1778_s28 = smov 0  }
   0x7 LB: > { %s1793_s29 = sadd.s32 4294967295, %s1683_s28   ;;  %s1360_s30 = sadd.s32 4294967294, %s1683_s28   ;;  %s1683_s28 = sphi %s1778_s28, %s2061_s28   ;;  %s1679_s27 = sphi %s1776_s27, %s2060_s27   ;;  %s1675_s26 = sphi %s1774_s26, %s2059_s26   ;;  %s1671_s25 = sphi %s1772_s25, %s2058_s25  }
   0x8   : > { %s1797_s14 = sadd.s32 1, %s1683_s28   ;;  %s311_s15 = sadd.s32 1, %s1679_s27 }
   0x9   : > { %s308_s16 = ssub.s32 %s1683_s28, %s1797_s14  ;;  %p321_p0 = scmp.ne.s32.totalorder %s1679_s27, %s1675_s26 }
   0xa   : > { %p309_p1 = scmp.eq.s32.totalorder %s308_s16, 0  ;;  %p322_p2 = scmp.eq.s32.totalorder %s1793_s29, 1 }
   0xb   : > { %p327_p3 = scmp.ne.s32.totalorder %s1675_s26, %s1671_s25  ;;  %p328_p4 = scmp.eq.s32.totalorder %s1360_s30, 1 }
   0xc   : > { %s1808_s17 = scalar_select %p309_p1, %s1679_s27, %s311_s15  }
   0xd   : > { %p1810_p5 = por %p322_p2, %p321_p0  ;;  %p1814_p6 = por %p328_p4, %p327_p3 }
   0xe   : > { %p1363_p7 = scmp.ge.s32.totalorder %s1683_s28, 1  ;;  %p389_p8 = scmp.lt.s32.totalorder %s1683_s28, 3 }
  0x10   : > { %p390_p9 = pnand %p1363_p7, %p389_p8 }
  0x11   : > { %p432_p10 = scmp.lt.s32.totalorder (!%p390_p9), %s1793_s29, 1  ;;  %s2055_s0 = sld [smem:[#allocation6_spill]] (!%p390_p9) }
  0x12   : > { %393 = sbr.rel (%p390_p9) target bundleno = 2495 (0x9bf), region = 72  ;;  %s2056_s1 = sld [smem:[#allocation7_spill]] (!%p390_p9) }
  0x13   : > { %s2057_s2 = sld [smem:[#allocation8_spill]] (!%p390_p9)  ;;  %s1687_s16 = smov (!%p390_p9), 96  }
  0x14   : > { %s1690_s22 = smov (!%p390_p9), 80   ;;  %s1691_s23 = smov (!%p390_p9), 112  }
  0x15   : > { %s1693_s30 = smov (!%p390_p9), 104   ;;  %s1694_s15 = smov (!%p390_p9), 64  }
  0x17   : > { %s433_s20 = scalar_select %p432_p10, %s1793_s29, 1  ;;  %vm438_vm0 = vcmask 261120   ;;  %v1585_v7 = vld [vmem:[%s2039_s3 + $0x8] sm:$0xff]   ;;  %v1685_v8 = vmov 0.0   ;;  %vm1686_vm1 = vmmov 0   ;;  %v1586_v9 = vld [vmem:[%s2039_s3] sm:$0xff]  }
  0x18   : > { %1438 = vmatprep.subr.bf16.mxu0 %v1685_v8  ;;  %1442 = vmatprep.mubr.msk.bf16.mxu0 %vm1686_vm1, %v1685_v8  ;;  %v1366_v14 = vld [vmem:[%s2056_s1] ss:$0 sm:$0xff]  ;;  %vm542_vm2 = vcmask 64512   ;;  %vm606_vm3 = vcmask 1043456   ;;  %vm766_vm4 = vcmask 130112   ;;  %vm882_vm5 = vcmask 195712  }
  0x19   : > { %s1365_s21 = sshll.u32 %s433_s20, 3  ;;  %1439 = vmatpush3.bf16.msra.mxu0 %v1585_v7  ;;  %1458 = vmatprep.subr.bf16.mxu1 %v1685_v8  ;;  %v1367_v16 = vld [vmem:[%s2057_s2] ss:$0 sm:$0xff]  ;;  %s1688_s20 = smov 120   ;;  %vm998_vm6 = vcmask 261312  }
  0x1a   : > { %s435_s24 = scalar_lea.vmem %s2055_s0, %s1365_s21  ;;  %1440 = vmatprep.subr.bf16.mxu0 %v1685_v8  ;;  %1460 = vmatprep.mubr.msk.bf16.mxu1 %vm1686_vm1, %v1685_v8  ;;  %v1368_v20 = vld [vmem:[%s2040_s4] ss:$0 sm:$0xff]  ;;  %s1689_s21 = smov 88  }
  0x1b   : > { %v1825_v0 = vld [vmem:[%s435_s24] sm:$0xff]  ;;  %s1692_s24 = smov 72  }
  0x1c   : > { %v439_v1 = vsel %vm438_vm0, %v1825_v0, 0.0 }
  0x1d   : > { %440 = vadd.xlane.f32.xlu0 %v439_v1  ;;  %1441 = vmatpush3.bf16.msra.mxu0 %v1586_v9 }
  0x1e   : > { %1446 = vmatprep.subr.bf16.mxu0 %v1685_v8 }
  0xa6   : > { %v441_v2 = vpop.xlane.xlu0 %440 }
  0xa7   : > { %v443_v3 = vmul.f32 0.03125, %v441_v2 }
  0xa9   : > { %v444_v4 = vsub.f32 %v1825_v0, %v443_v3 }
  0xab   : > { %v445_v5 = vmul.f32 %v444_v4, %v444_v4 }
  0xad   : > { %v446_v6 = vsel %vm438_vm0, %v445_v5, 0.0 }
  0xae   : > { %447 = vadd.xlane.f32.xlu0 %v446_v6 }
 0x137   : > { %v448_v10 = vpop.xlane.xlu0 %447 }
 0x138   : > { %v449_v11 = vmul.f32 0.03125, %v448_v10 }
 0x13a   : > { %v450_v12 = vadd.f32 1e-05, %v449_v11 }
 0x13c   : > { %1599 = vrsqrt.f32 %v450_v12 }
 0x149   : > { %v1600_v13 = vpop.eup %1599 }
 0x14a   : > { %v452_v15 = vmul.f32 %v1600_v13, %v444_v4 }
 0x14c   : > { %v460_v17 = vmul.f32 %v1366_v14, %v452_v15 }
 0x14e   : > { %v468_v18 = vadd.f32 %v1367_v16, %v460_v17 }
 0x150   : > { %v469_v19 = vpack.c.bf16 %v468_v18, %v468_v18 }
 0x152   : > { %1443 = vmatmul.mubr.msk.bf16.vlgmr.msra.gmra.mxu0 %vm438_vm0, %v469_v19 }
 0x153   : > { %1448 = vmatprep.mubr.msk.bf16.mxu0 %vm1686_vm1, %v1685_v8 }
 0x212   : > { %v530_v21 = vpop.f32.mrf.mxu0 }
 0x213   : > { %v531_v22 = vadd.f32 %v1368_v20, %v530_v21 }
 0x214   : > { %v1444_v23 = vpop.f32.mrf.mxu0 }
 0x215   : > { %v536_v24 = vmul.f32 0.35355338, %v531_v22  ;;  %v1857_v25 = vpack.c.bf16 %v531_v22, %v531_v22 }
 0x216   : > { %v533_v26 = vpop.f32.mrf.mxu0 }
 0x217   : > { %v537_v27 = vpack.c.bf16 %v536_v24, %v536_v24  ;;  %540 = vrot.lane.b32.xlu1 %v1857_v25, %s1687_s16  ;;  %s1695_s16 = smov 56  }
 0x218   : > { %v1445_v28 = vpop.f32.mrf.mxu0 }
 0x219   : > { %652 = vrot.lane.b32.xlu0 %v537_v27, %s1688_s20  ;;  %s1696_s20 = smov 48  }
 0x21b   : > { %654 = vrot.lane.b32.xlu1 %v1857_v25, %s1689_s21  ;;  %s1697_s21 = smov 40  }
 0x21f   : > { %770 = vrot.lane.b32.xlu1 %v1857_v25, %s1690_s22  ;;  %s1698_s22 = smov 8  }
 0x223   : > { %768 = vrot.lane.b32.xlu1 %v537_v27, %s1691_s23 }
 0x227   : > { %886 = vrot.lane.b32.xlu1 %v1857_v25, %s1692_s24 }
 0x22b   : > { %884 = vrot.lane.b32.xlu1 %v537_v27, %s1693_s30  ;;  %s429_s30 = sand.u32 1, %s1675_s26  }
 0x289   : > { %v541_v29 = vpop.permute.xlu1 %540 }
 0x28a   : > { %v547_v30 = vsel %vm542_vm2, %v541_v29, 0 }
 0x28b   : > { %1447 = vmatpush3.bf16.xpose.msra.mxu0 %v547_v30  ;;  %v653_v34 = vpop.permute.xlu0 %652 }
 0x28c   : > { %1452 = vmatprep.subr.bf16.mxu0 %v1685_v8 }
 0x28d   : > { %v655_v31 = vpop.permute.xlu1 %654 }
 0x28e   : > { %v660_v32 = vsel %vm542_vm2, %v655_v31, 0 }
 0x28f   : > { %1459 = vmatpush3.bf16.xpose.msra.mxu1 %v660_v32 }
 0x290   : > { %1470 = vmatprep.subr.bf16.mxu1 %v1685_v8 }
 0x291   : > { %v771_v33 = vpop.permute.xlu1 %770 }
 0x292   : > { %1449 = vmatmul.mubr.msk.bf16.vlgmr.msra.gmra.mxu0 %vm542_vm2, %v537_v27  ;;  %v776_v36 = vsel %vm542_vm2, %v771_v33, 0 }
 0x293   : > { %1454 = vmatprep.mubr.msk.bf16.mxu0 %vm1686_vm1, %v1685_v8 }
 0x295   : > { %v769_v35 = vpop.permute.xlu1 %768 }
 0x296   : > { %1461 = vmatmul.mubr.msk.bf16.vlgmr.msra.gmra.mxu1 %vm542_vm2, %v653_v34 }
 0x297   : > { %1471 = vmatpush3.bf16.xpose.msra.mxu1 %v776_v36  ;;  %1472 = vmatprep.mubr.msk.bf16.mxu1 %vm1686_vm1, %v1685_v8 }
 0x298   : > { %1482 = vmatprep.subr.bf16.mxu1 %v1685_v8 }
 0x299   : > { %v887_v37 = vpop.permute.xlu1 %886 }
 0x29a   : > { %v892_v38 = vsel %vm542_vm2, %v887_v37, 0 }
 0x29d   : > { %v885_v39 = vpop.permute.xlu1 %884 }
 0x29e   : > { %1473 = vmatmul.mubr.msk.bf16.vlgmr.msra.gmra.mxu1 %vm542_vm2, %v769_v35 }
 0x29f   : > { %1483 = vmatpush3.bf16.xpose.msra.mxu1 %v892_v38  ;;  %1484 = vmatprep.mubr.msk.bf16.mxu1 %vm1686_vm1, %v1685_v8 }
 0x2a0   : > { %1494 = vmatprep.subr.bf16.mxu1 %v1685_v8 }
 0x2a6   : > { %1485 = vmatmul.mubr.msk.bf16.vlgmr.msra.gmra.mxu1 %vm542_vm2, %v885_v39 }
 0x2a7   : > { %1498 = vmatprep.mubr.msk.bf16.mxu1 %vm1686_vm1, %v1685_v8 }
 0x352   : > { %v583_v40 = vpop.f32.mrf.mxu0 }
 0x353   : > { %v589_v41 = vsel %vm542_vm2, %v583_v40, -inf }
 0x354   : > { %590 = vmax.xlane.f32.xlu1 %v589_v41  ;;  %v1450_v42 = vpop.f32.mrf.mxu0 }
 0x356   : > { %v586_v43 = vpop.f32.mrf.mxu0  ;;  %v696_v44 = vpop.f32.mrf.mxu1 }
 0x357   : > { %v702_v45 = vsel %vm542_vm2, %v696_v44, -inf }
 0x358   : > { %703 = vmax.xlane.f32.xlu0 %v702_v45  ;;  %v1451_v46 = vpop.f32.mrf.mxu0  ;;  %v1462_v47 = vpop.f32.mrf.mxu1 }
 0x35a   : > { %v699_v48 = vpop.f32.mrf.mxu1 }
 0x35c   : > { %v1463_v49 = vpop.f32.mrf.mxu1 }
 0x35e   : > { %v812_v50 = vpop.f32.mrf.mxu1 }
 0x35f   : > { %v818_v51 = vsel %vm542_vm2, %v812_v50, -inf }
 0x360   : > { %v1474_v52 = vpop.f32.mrf.mxu1  ;;  %819 = vmax.xlane.f32.xlu1 %v818_v51  ;;  %v1588_v51 = vld [vmem:[%s2041_s5] sm:$0xff]  }
 0x362   : > { %v815_v53 = vpop.f32.mrf.mxu1 }
 0x364   : > { %v1475_v54 = vpop.f32.mrf.mxu1 }
 0x366   : > { %v928_v55 = vpop.f32.mrf.mxu1 }
 0x367   : > { %v934_v56 = vsel %vm542_vm2, %v928_v55, -inf }
 0x368   : > { %935 = vmax.xlane.f32.xlu0 %v934_v56  ;;  %v1486_v57 = vpop.f32.mrf.mxu1 }
 0x36a   : > { %v931_v58 = vpop.f32.mrf.mxu1 }
 0x36c   : > { %v1487_v59 = vpop.f32.mrf.mxu1 }
 0x3dd   : > { %v591_v60 = vpop.xlane.xlu1 %590 }
 0x3de   : > { %v592_v61 = vsub.f32 %v583_v40, %v591_v60 }
 0x3e0   : > { %v593_v62 = vmul.f32 1.442695, %v592_v61 }
 0x3e1   : > { %v704_v63 = vpop.xlane.xlu0 %703 }
 0x3e2   : > { %1601 = vpow2.f32 %v593_v62  ;;  %v705_v1 = vsub.f32 %v696_v44, %v704_v63 }
 0x3e4   : > { %v706_v2 = vmul.f32 1.442695, %v705_v1 }
 0x3e6   : > { %1603 = vpow2.f32 %v706_v2  ;;  %v1380_v2 = vld [vmem:[%s2042_s6] ss:$0 sm:$0xff] }
 0x3e9   : > { %v820_v13 = vpop.xlane.xlu1 %819 }
 0x3ea   : > { %v821_v14 = vsub.f32 %v812_v50, %v820_v13  ;;  %v1587_v50 = vld [vmem:[%s2041_s5 + $0x8] sm:$0xff]  }
 0x3eb   : > { %1495 = vmatpush3.bf16.msra.mxu1 %v1587_v50 }
 0x3ec   : > { %v822_v15 = vmul.f32 1.442695, %v821_v14  ;;  %1496 = vmatprep.subr.bf16.mxu1 %v1685_v8 }
 0x3ef   : > { %v1602_v3 = vpop.eup %1601  ;;  %1497 = vmatpush3.bf16.msra.mxu1 %v1588_v51 }
 0x3f0   : > { %v595_v4 = vsel %vm542_vm2, %v1602_v3, 0.0  ;;  %1510 = vmatprep.subr.bf16.mxu1 %v1685_v8 }
 0x3f1   : > { %v936_v5 = vpop.xlane.xlu0 %935  ;;  %596 = vadd.xlane.f32.xlu1 %v595_v4 }
 0x3f2   : > { %v937_v6 = vsub.f32 %v928_v55, %v936_v5 }
 0x3f3   : > { %v1604_v7 = vpop.eup %1603 }
 0x3f4   : > { %v938_v9 = vmul.f32 1.442695, %v937_v6  ;;  %v708_v10 = vsel %vm542_vm2, %v1604_v7, 0.0 }
 0x3f5   : > { %709 = vadd.xlane.f32.xlu0 %v708_v10 }
 0x3f6   : > { %1605 = vpow2.f32 %v938_v9 }
 0x3f7   : > { %1607 = vpow2.f32 %v822_v15 }
 0x402   : > { %601 = vrot.lane.b32.xlu1 %v1857_v25, %s1694_s15  ;;  %s1364_s15 = sshll.u32 %s429_s30, 3 }
 0x403   : > { %v1606_v11 = vpop.eup %1605 }
 0x404   : > { %v940_v12 = vsel %vm542_vm2, %v1606_v11, 0.0  ;;  %v1608_v16 = vpop.eup %1607 }
 0x405   : > { %941 = vadd.xlane.f32.xlu0 %v940_v12  ;;  %v824_v17 = vsel %vm542_vm2, %v1608_v16, 0.0 }
 0x41b   : > { %714 = vrot.lane.b32.xlu0 %v1857_v25, %s1695_s16  ;;  %s1699_s16 = smov 16  }
 0x426   : > { %825 = vadd.xlane.f32.xlu1 %v824_v17 }
 0x437   : > { %830 = vrot.lane.b32.xlu1 %v1857_v25, %s1696_s20  ;;  %s1700_s20 = smov 24  }
 0x43b   : > { %946 = vrot.lane.b32.xlu1 %v1857_v25, %s1697_s21  ;;  %s1401_s21 = sshll.u32 %s1793_s29, 7  ;;  %s1288_s29 = scalar_lea.sflag [#allocation4], %s429_s30 }
 0x43c   : > { %s1994_s1 = scalar_lea.hbm %s2049_s13, %s1401_s21 }
 0x47a   : > { %v597_v18 = vpop.xlane.xlu1 %596 }
 0x47b   : > { %1609 = vrcp.f32 %v597_v18 }
 0x47e   : > { %v710_v19 = vpop.xlane.xlu0 %709  ;;  %v602_v20 = vpop.permute.xlu1 %601 }
 0x47f   : > { %v608_v21 = vsel %vm606_vm3, %v602_v20, 0  ;;  %1611 = vrcp.f32 %v710_v19 }
 0x480   : > { %1453 = vmatpush3.bf16.msra.mxu0 %v608_v21  ;;  %v1384_v21 = vld [vmem:[%s2043_s7] ss:$0 sm:$0xff] }
 0x481   : > { %1464 = vmatprep.subr.bf16.mxu0 %v1685_v8 }
 0x488   : > { %v1610_v22 = vpop.eup %1609 }
 0x489   : > { %v599_v23 = vmul.f32 %v1610_v22, %v1602_v3 }
 0x48b   : > { %v600_v24 = vpack.c.bf16 %v599_v23, %v599_v23  ;;  %v1385_v23 = vld [vmem:[%s2044_s8] ss:$0 sm:$0xff] }
 0x48c   : > { %v1612_v26 = vpop.eup %1611 }
 0x48d   : > { %1455 = vmatmul.mubr.msk.bf16.vlgmr.msra.gmra.mxu0 %vm542_vm2, %v600_v24  ;;  %v712_v25 = vmul.f32 %v1612_v26, %v1604_v7 }
 0x48e   : > { %v942_v27 = vpop.xlane.xlu0 %941  ;;  %1466 = vmatprep.mubr.msk.bf16.mxu0 %vm1686_vm1, %v1685_v8 }
 0x48f   : > { %v713_v30 = vpack.c.bf16 %v712_v25, %v712_v25  ;;  %v1591_v25 = vld [vmem:[%s2047_s11 + $0x38] sm:$0xff]  }
 0x492   : > { %v715_v28 = vpop.permute.xlu0 %714 }
 0x493   : > { %v720_v29 = vsel %vm606_vm3, %v715_v28, 0  ;;  %v1592_v28 = vld [vmem:[%s2047_s11 + $0x30] sm:$0xff]  }
 0x494   : > { %1465 = vmatpush3.bf16.msra.mxu0 %v720_v29  ;;  %v1593_v29 = vld [vmem:[%s2047_s11 + $0x28] sm:$0xff]  }
 0x495   : > { %1476 = vmatprep.subr.bf16.mxu0 %v1685_v8 }
 0x497   : > { %1467 = vmatmul.mubr.msk.bf16.vlgmr.msra.gmra.mxu0 %vm542_vm2, %v713_v30  ;;  %v1594_v30 = vld [vmem:[%s2047_s11 + $0x20] sm:$0xff]  }
 0x498   : > { %1478 = vmatprep.mubr.msk.bf16.mxu0 %vm1686_vm1, %v1685_v8 }
 0x4af   : > { %v826_v31 = vpop.xlane.xlu1 %825 }
 0x4b0   : > { %1613 = vrcp.f32 %v826_v31  ;;  %v1595_v31 = vld [vmem:[%s2047_s11 + $0x18] sm:$0xff]  }
 0x4b1   : > { %1615 = vrcp.f32 %v942_v27 }
 0x4b3   : > { %v831_v32 = vpop.permute.xlu1 %830 }
 0x4b4   : > { %v836_v33 = vsel %vm606_vm3, %v831_v32, 0  ;;  %v1596_v32 = vld [vmem:[%s2047_s11 + $0x10] sm:$0xff]  }
 0x4b5   : > { %1477 = vmatpush3.bf16.msra.mxu0 %v836_v33  ;;  %v1597_v33 = vld [vmem:[%s2047_s11 + $0x8] sm:$0xff]  }
 0x4b6   : > { %1488 = vmatprep.subr.bf16.mxu0 %v1685_v8 }
 0x4b7   : > { %v947_v36 = vpop.permute.xlu1 %946 }
 0x4b8   : > { %v952_v39 = vsel %vm606_vm3, %v947_v36, 0 }
 0x4bd   : > { %v1614_v34 = vpop.eup %1613 }
 0x4be   : > { %v828_v35 = vmul.f32 %v1614_v34, %v1608_v16  ;;  %v1616_v38 = vpop.eup %1615  ;;  %v1589_v16 = vld [vmem:[%s2045_s9 + $0x8] sm:$0xff]   ;;  %v1598_v34 = vld [vmem:[%s2047_s11] sm:$0xff]  }
 0x4bf   : > { %v944_v40 = vmul.f32 %v1616_v38, %v1606_v11 }
 0x4c0   : > { %v829_v37 = vpack.c.bf16 %v828_v35, %v828_v35  ;;  %v1386_v35 = vld [vmem:[%s2046_s10] ss:$0 sm:$0xff] }
 0x4c1   : > { %v945_v41 = vpack.c.bf16 %v944_v40, %v944_v40 }
 0x4c2   : > { %1479 = vmatmul.mubr.msk.bf16.vlgmr.msra.gmra.mxu0 %vm542_vm2, %v829_v37 }
 0x4c3   : > { %1489 = vmatpush3.bf16.msra.mxu0 %v952_v39  ;;  %1490 = vmatprep.mubr.msk.bf16.mxu0 %vm1686_vm1, %v1685_v8 }
 0x4c4   : > { %1502 = vmatprep.subr.bf16.mxu0 %v1685_v8 }
 0x4ca   : > { %1491 = vmatmul.mubr.msk.bf16.vlgmr.msra.gmra.mxu0 %vm542_vm2, %v945_v41 }
 0x4cb   : > { %1506 = vmatprep.mubr.msk.bf16.mxu0 %vm1686_vm1, %v1685_v8  ;;  %1503 = vmatpush3.bf16.msra.mxu0 %v1589_v16 }
 0x4cc   : > { %1504 = vmatprep.subr.bf16.mxu0 %v1685_v8 }
 0x54d   : > { %v644_v42 = vpop.f32.mrf.mxu0 }
 0x54e   : > { %650 = vst.msk [vmem:[#allocation2] sm:$0xff] %vm542_vm2, %v644_v42 }
 0x54f   : > { %v1456_v43 = vpop.f32.mrf.mxu0 }
 0x551   : > { %v647_v44 = vpop.f32.mrf.mxu0 }
 0x553   : > { %v1457_v45 = vpop.f32.mrf.mxu0 }
 0x557   : > { %v756_v46 = vpop.f32.mrf.mxu0 }
 0x558   : > { %763 = vrot.lane.b32.xlu0 %v756_v46, %s1698_s22  ;;  %s431_s22 = scalar_lea.vmem [#allocation3], %s1364_s15 }
 0x559   : > { %v1468_v47 = vpop.f32.mrf.mxu0  ;;  %s1301_s23 = sshll.u32 %s431_s22, 4  ;;  %s1996_s23 = int_to_ptr.vmem [resolvable:$true] %s1301_s23 }
 0x55a   : > { %v1391_v47 = vld [vmem:[%s2048_s12] ss:$0 sm:$0xff]  ;;  %s1623_s15 = scalar_lea.vmem %s1996_s23, 128 }
 0x55b   : > { %v759_v48 = vpop.f32.mrf.mxu0  ;;  %p1624_p11 = scmp.ne.s32.totalorder %s1996_s23, %s1623_s15 }
 0x55d   : > { %v1469_v49 = vpop.f32.mrf.mxu0  ;;  %p1625_p12 = pnand %p1624_p11, %p1810_p5 }
 0x55f   : > { %p1626_p13 = pneg %p1625_p12 }
 0x582   : > { %v872_v52 = vpop.f32.mrf.mxu0 }
 0x583   : > { %879 = vrot.lane.b32.xlu1 %v872_v52, %s1699_s16  ;;  %s1701_s16 = smov [#allocation3]  }
 0x584   : > { %v1480_v53 = vpop.f32.mrf.mxu0 }
 0x586   : > { %v875_v54 = vpop.f32.mrf.mxu0 }
 0x588   : > { %v1481_v55 = vpop.f32.mrf.mxu0 }
 0x58a   : > { %v988_v56 = vpop.f32.mrf.mxu0 }
 0x58b   : > { %995 = vrot.lane.b32.xlu0 %v988_v56, %s1700_s20  ;;  %s1627_s20 = sshll.u32 %s1701_s16, 4  ;;  %s1628_s20 = int_to_ptr.vmem [resolvable:$false] %s1627_s20 }
 0x58c   : > { %v1492_v57 = vpop.f32.mrf.mxu0  ;;  %s1629_s0 = scalar_lea.vmem %s1628_s20, 256  ;;  %p1630_p0 = scmp.lt.s32.totalorder %s1996_s23, %s1628_s20 }
 0x58d   : > { %p1631_p1 = scmp.lt.s32.totalorder %s1629_s0, %s1623_s15 }
 0x58e   : > { %v991_v58 = vpop.f32.mrf.mxu0 }
 0x58f   : > { %p1632_p2 = por %p1631_p1, %p1630_p0 }
 0x590   : > { %v1493_v59 = vpop.f32.mrf.mxu0 }
 0x591   : > { %p1633_p3 = pnand %p1632_p2, %p1626_p13 }
 0x5ca   : > { %v764_v60 = vpop.permute.xlu0 %763 }
 0x5cb   : > { %767 = vst.msk [vmem:[#allocation2] sm:$0xff] %vm766_vm4, %v764_v60 }
 0x5f5   : > { %v880_v61 = vpop.permute.xlu1 %879 }
 0x5f6   : > { %883 = vst.msk [vmem:[#allocation2] sm:$0xff] %vm882_vm5, %v880_v61 }
 0x5fd   : > { %v996_v62 = vpop.permute.xlu0 %995 }
 0x5fe   : > { %999 = vst.msk [vmem:[#allocation2] sm:$0xff] %vm998_vm6, %v996_v62 }
 0x605   : > { %v1000_v63 = vld [vmem:[#allocation2] sm:$0xff] }
 0x606   : > { %v1001_v1 = vpack.c.bf16 %v1000_v63, %v1000_v63 }
 0x608   : > { %1499 = vmatmul.mubr.msk.bf16.vlgmr.msra.gmra.mxu1 %vm438_vm0, %v1001_v1 }
 0x609   : > { %1526 = vmatprep.mubr.msk.bf16.mxu1 %vm1686_vm1, %v1685_v8  ;;  %1511 = vmatpush3.bf16.msra.mxu1 %v1591_v25 }
 0x60a   : > { %1512 = vmatprep.subr.bf16.mxu1 %v1685_v8 }
 0x60d   : > { %1513 = vmatpush3.bf16.msra.mxu1 %v1592_v28 }
 0x60e   : > { %1514 = vmatprep.subr.bf16.mxu1 %v1685_v8 }
 0x611   : > { %1515 = vmatpush3.bf16.msra.mxu1 %v1593_v29 }
 0x612   : > { %1516 = vmatprep.subr.bf16.mxu1 %v1685_v8 }
 0x615   : > { %1517 = vmatpush3.bf16.msra.mxu1 %v1594_v30 }
 0x616   : > { %1518 = vmatprep.subr.bf16.mxu1 %v1685_v8 }
 0x619   : > { %1519 = vmatpush3.bf16.msra.mxu1 %v1595_v31 }
 0x61a   : > { %1520 = vmatprep.subr.bf16.mxu1 %v1685_v8 }
 0x61d   : > { %1521 = vmatpush3.bf16.msra.mxu1 %v1596_v32 }
 0x61e   : > { %1522 = vmatprep.subr.bf16.mxu1 %v1685_v8 }
 0x621   : > { %1523 = vmatpush3.bf16.msra.mxu1 %v1597_v33 }
 0x622   : > { %1524 = vmatprep.subr.bf16.mxu1 %v1685_v8 }
 0x625   : > { %1525 = vmatpush3.bf16.msra.mxu1 %v1598_v34 }
 0x6c8   : > { %v1062_v3 = vpop.f32.mrf.mxu1 }
 0x6c9   : > { %v1063_v4 = vadd.f32 %v1380_v2, %v1062_v3 }
 0x6ca   : > { %v1500_v5 = vpop.f32.mrf.mxu1 }
 0x6cb   : > { %v1931_v6 = vadd.f32 %v1063_v4, %v1825_v0  ;;  %v1590_v0 = vld [vmem:[%s2045_s9] sm:$0xff]  }
 0x6cc   : > { %v1065_v7 = vpop.f32.mrf.mxu1  ;;  %1505 = vmatpush3.bf16.msra.mxu0 %v1590_v0 }
 0x6cd   : > { %v1069_v9 = vsel %vm438_vm0, %v1931_v6, 0.0 }
 0x6ce   : > { %1070 = vadd.xlane.f32.xlu1 %v1069_v9  ;;  %v1501_v10 = vpop.f32.mrf.mxu1 }
 0x757   : > { %v1071_v11 = vpop.xlane.xlu1 %1070 }
 0x758   : > { %v1072_v12 = vmul.f32 0.03125, %v1071_v11 }
 0x75a   : > { %v1073_v13 = vsub.f32 %v1931_v6, %v1072_v12 }
 0x75c   : > { %v1074_v14 = vmul.f32 %v1073_v13, %v1073_v13 }
 0x75e   : > { %v1075_v15 = vsel %vm438_vm0, %v1074_v14, 0.0 }
 0x75f   : > { %1076 = vadd.xlane.f32.xlu0 %v1075_v15 }
 0x7e8   : > { %v1077_v17 = vpop.xlane.xlu0 %1076 }
 0x7e9   : > { %v1078_v18 = vmul.f32 0.03125, %v1077_v17 }
 0x7eb   : > { %v1079_v19 = vadd.f32 1e-05, %v1078_v18 }
 0x7ed   : > { %1617 = vrsqrt.f32 %v1079_v19 }
 0x7fa   : > { %v1618_v20 = vpop.eup %1617 }
 0x7fb   : > { %v1081_v22 = vmul.f32 %v1618_v20, %v1073_v13 }
 0x7fd   : > { %v1089_v24 = vmul.f32 %v1384_v21, %v1081_v22 }
 0x7ff   : > { %v1097_v26 = vadd.f32 %v1385_v23, %v1089_v24 }
 0x801   : > { %v1098_v27 = vpack.c.bf16 %v1097_v26, %v1097_v26 }
 0x803   : > { %1507 = vmatmul.mubr.msk.bf16.vlgmr.msra.gmra.mxu0 %vm438_vm0, %v1098_v27 }
 0x8c3   : > { %v1159_v36 = vpop.f32.mrf.mxu0 }
 0x8c4   : > { %v1160_v37 = vadd.f32 %v1386_v35, %v1159_v36 }
 0x8c5   : > { %v1508_v38 = vpop.f32.mrf.mxu0 }
 0x8c6   : > { %v1390_v39 = vmul.f32 -1.702, %v1160_v37 }
 0x8c7   : > { %v1162_v40 = vpop.f32.mrf.mxu0 }
 0x8c8   : > { %v1167_v41 = vmul.f32 1.442695, %v1390_v39 }
 0x8c9   : > { %v1509_v42 = vpop.f32.mrf.mxu0 }
 0x8ca   : > { %1619 = vpow2.f32 %v1167_v41 }
 0x8d7   : > { %v1620_v8 = vpop.eup %1619 }
 0x8d8   : > { %v1169_v43 = vadd.f32 1.0, %v1620_v8 }
 0x8da   : > { %1621 = vrcp.f32 %v1169_v43 }
 0x8e7   : > { %v1622_v44 = vpop.eup %1621 }
 0x8e8   : > { %v1172_v45 = vmul.f32 %v1622_v44, %v1160_v37 }
 0x8ea   : > { %v1173_v46 = vpack.c.bf16 %v1172_v45, %v1172_v45 }
 0x8ec   : > { %1527 = vmatmul.mubr.bf16.vlgmr.msra.gmra.mxu1 %v1173_v46 }
 0x9ac   : > { %v1279_v48 = vpop.f32.mrf.mxu1 }
 0x9ad   : > { %v1280_v49 = vadd.f32 %v1391_v47, %v1279_v48 }
 0x9ae   : > { %v1528_v50 = vpop.f32.mrf.mxu1 }
 0x9af   : > { %v1285_v51 = vadd.f32 %v1280_v49, %v1931_v6 }
 0x9b0   : > { %v1282_v52 = vpop.f32.mrf.mxu1 }
 0x9b1   : > { %1286 = vst.msk [vmem:[%s431_s22] sm:$0xff] %vm438_vm0, %v1285_v51 }
 0x9b2   : > { %v1529_v53 = vpop.f32.mrf.mxu1 }
 0x9b3   : > { %1636 = shalt.err (!%p1633_p3)
}
 0x9b4   : > { %s1637_s21 = scalar_lea.hbm %s1994_s1, 128  ;;  %s1641_s24 = scalar_lea.hbm %s2049_s13, 256 }
 0x9b5   : > { %p1638_p4 = scmp.ne.s32.totalorder %s1994_s1, %s1637_s21  ;;  %p1642_p9 = scmp.lt.s32.totalorder %s1994_s1, %s2049_s13 }
 0x9b6   : > { %p1643_p10 = scmp.lt.s32.totalorder %s1641_s24, %s1637_s21 }
 0x9b7   : > { %p1639_p7 = pnand %p1638_p4, %p1810_p5 }
 0x9b8   : > { %p1644_p11 = por %p1643_p10, %p1642_p9 }
 0x9b9   : > { %p1640_p8 = pneg %p1639_p7 }
 0x9bb   : > { %p1645_p12 = pnand %p1644_p11, %p1640_p8 }
 0x9bd   : > { %1648 = shalt.err (!%p1645_p12)
}
 0x9be   : > { %1530 = dma.vmem_to_hbm [thread:$0]  (%p1810_p5), %s1996_s23, 128, %s1994_s1, %s1288_s29  }
 0x9bf PF: > { %p1536_p13 = scmp.ge.s32.totalorder %s1683_s28, 2  ;;  %s1313_s15 = sand.u32 1, %s1671_s25  }
 0x9c0   : > { %s1314_s2 = scalar_lea.sflag [#allocation4], %s1313_s15 }
 0x9c1   : > { %p1533_p0 = pnand %p1536_p13, %p1814_p6 }
 0x9c3   : > { %p1534_p1 = pneg %p1533_p0 }
 0x9c5   : > { %1666 = dma.done.wait (%p1534_p1), %s1314_s2, 128  }
 0x9c6   : > { %1668 = vsyncadd (%p1534_p1), %s1314_s2, 4294967168  ;;  %p23_p2 = scmp.ge.s32.totalorder %s1797_s14, 4   ;;  %s2058_s25 = smov %s1675_s26 }
 0x9c7   : > { %s2059_s26 = smov %s1679_s27  ;;  %s2060_s27 = smov %s1808_s17 }
 0x9c8   : > { %s2061_s28 = smov %s1797_s14  ;;  %25 = sbr.rel (!%p23_p2) target bundleno = 7 (0x7), region = 107 }
 0x9cd   :  { %1319 = vsyncpa [#allocation4], 1 }
 0x9ce   :  { %1321 = vsyncpa [#allocation4 + $0x1], 1 }

</bundles_post_ra>
